<compile_context>
chip_gen: v7x
topology: tpu7x:2x2x1
jax: 0.10.0
libtpu: 0.0.40
codegen_flags: <defaults>
</compile_context>

<pallas_src>
import numpy as np
import jax
import jax.numpy as jnp
from jax import lax
from jax.experimental import pallas as pl
from jax.experimental.pallas import tpu as pltpu


def _cdiv(a: int, b: int) -> int:
    return (a + b - 1) // b


def _round_up(x: int, m: int) -> int:
    return _cdiv(x, m) * m


def _dct_ii_basis(n: int) -> jnp.ndarray:
    """Orthonormal DCT-II basis, shape (K=n, N=n). Row k is the k-th DCT atom."""
    k = np.arange(n, dtype=np.float64)[:, None]
    i = np.arange(n, dtype=np.float64)[None, :]
    basis = np.cos(np.pi / n * (i + 0.5) * k) * np.sqrt(2.0 / n)
    basis[0] *= 1.0 / np.sqrt(2.0)
    return jnp.asarray(basis, dtype=jnp.float32)


def _make_kernel(use_nt_matmul: bool):
    def kernel(frames_ref, dct_ref, scale_ref, x_ref, o_ref):
        # frames_ref: (tm, N)  raw time-major frames (ragged-tail rows may be stale)
        # dct_ref   : (C, N)   DCT-II basis (tiny, resident: constant index_map)
        # scale_ref : (C, 1)   channelwise scale (tiny, resident)
        # x_ref     : (C, tm)  residual input, lane-dense in time
        # o_ref     : (C, tm)  output, lane-dense in time
        if use_nt_matmul:
            # NT form on the MXU: contraction on the frame-sample axis of both
            # operands -> result comes out directly as (C, tm); no standalone
            # XLU transpose of a lane-padded (tm, 16) intermediate.
            y = lax.dot_general(
                dct_ref[...], frames_ref[...],
                dimension_numbers=(((1,), (1,)), ((), ())),
                preferred_element_type=jnp.float32)
        else:
            # Fallback (previously validated on HW): NN matmul + transpose.
            y = jnp.dot(frames_ref[...], dct_ref[...].T,
                        preferred_element_type=jnp.float32).T
        # spec_compression == 'log': clamp_min(1e-5).log(), on lane-dense vregs.
        # (maximum() before log also keeps stale ragged-tail lanes finite.)
        y = jnp.log(jnp.maximum(y, 1e-5))
        # Channelwise Scale (broadcast over time) + residual add; lane-dense store.
        o_ref[...] = x_ref[...] + scale_ref[...] * y
    return kernel


def spec_block(x, wav, scale, *, channels: int, stride: int, tm: int = 8192):
    """x: (B, C, T') f32, wav: (B, 1, T) f32, scale: (1, C, 1) f32 -> (B, C, T')."""
    B, C, Tp = x.shape
    assert C == channels
    assert stride == channels, "this STDCT uses non-overlapping frames (hop == N)"
    wav2d = wav.reshape(B, -1)
    T = wav2d.shape[1]
    assert T == Tp * stride, "x time dim must equal the number of STDCT frames"

    # Framing with hop == N is a pure metadata reshape (no HBM pass).
    frames = wav2d.reshape(B, Tp, channels)                    # (B, T', N)

    # ---- time-tile selection --------------------------------------------------
    # Lane-dense (multiple of 128), as large as the sequence allows; large tiles
    # amortize the ~0.35us per-grid-step overhead on this HBM-bound kernel.
    tm = max(128, min(_round_up(tm, 128), _round_up(Tp, 128)))
    # Keep at least 2 grid steps so both v7x TensorCores get work when B == 1.
    if B * _cdiv(Tp, tm) < 2 and Tp > 128:
        tm = _round_up(_cdiv(Tp, 2), 128)
    n_t = _cdiv(Tp, tm)                                        # ragged last tile OK
    grid = (B, n_t)

    dct = _dct_ii_basis(channels)                              # (C, N)
    scale_c1 = scale.reshape(channels, 1).astype(jnp.float32)  # (C, 1)

    # ---- VMEM accounting / scoped limit ---------------------------------------
    frames_blk_bytes = tm * 128 * 4          # (tm, 16) f32, lanes padded 16 -> 128
    xo_blk_bytes = channels * tm * 4         # (C, tm) f32, exact size
    # 3x frames (Buffered(3)) + 3x x + 2x out + ~4 tile-sized temporaries + slack
    est_bytes = 3 * frames_blk_bytes + (3 + 2 + 4) * xo_blk_bytes + (2 << 20)
    vmem_limit = int(min(100 * 2**20, max(32 * 2**20, 1.5 * est_bytes)))

    # Advisory cost hint: HBM-bound (~2.7 flops/byte) on every TPU generation.
    n_el = B * Tp * channels
    cost = pl.CostEstimate(
        flops=2 * n_el * channels,
        transcendentals=n_el,
        bytes_accessed=4 * (3 * n_el + dct.size + scale_c1.size),
    )

    def build(use_nt: bool, n_buf: int):
        stream_kw = {}
        if n_buf > 2:
            stream_kw = dict(pipeline_mode=pl.Buffered(n_buf))
        return pl.pallas_call(
            _make_kernel(use_nt),
            out_shape=jax.ShapeDtypeStruct((B, C, Tp), jnp.float32),
            grid_spec=pltpu.PrefetchScalarGridSpec(
                num_scalar_prefetch=0,
                grid=grid,
                in_specs=[
                    # raw frames tile (tm, N), streamed with deeper pipelining
                    pl.BlockSpec((None, tm, channels),
                                 lambda b, i: (b, i, 0), **stream_kw),
                    # DCT basis: tiny, constant index_map -> resident in VMEM
                    pl.BlockSpec((channels, channels), lambda b, i: (0, 0)),
                    # channelwise scale: tiny, resident
                    pl.BlockSpec((channels, 1), lambda b, i: (0, 0)),
                    # residual x tile in native NCW layout: (C, tm), lane-dense
                    pl.BlockSpec((None, channels, tm),
                                 lambda b, i: (b, 0, i), **stream_kw),
                ],
                # output in native NCW layout: (C, tm); unmasked lane-dense
                # stores except on the ragged last time tile.
                out_specs=pl.BlockSpec((None, channels, tm), lambda b, i: (b, 0, i)),
            ),
            compiler_params=pltpu.CompilerParams(
                dimension_semantics=("parallel", "parallel"),
                vmem_limit_bytes=vmem_limit,
            ),
            cost_estimate=cost,
        )

    try:
        out = build(True, 3)(frames, dct, scale_c1, x)
        return jax.block_until_ready(out)
    except Exception:
        # Fall back to the configuration previously validated on hardware
        # (NN matmul + in-kernel transpose, default double-buffering).
        out = build(False, 2)(frames, dct, scale_c1, x)
        return jax.block_until_ready(out)


if __name__ == "__main__":
    # Small shapes consistent with the module: channels=16, stride=16,
    # wav length T = 8192 -> T' = 512 spectrogram frames, batch = 2.
    B, C, S = 2, 16, 16
    Tp = 512
    T = Tp * S

    key = jax.random.PRNGKey(0)
    kx, kw, ks, kx2, kw2 = jax.random.split(key, 5)
    x = jax.random.normal(kx, (B, C, Tp), dtype=jnp.float32)
    wav = jax.random.normal(kw, (B, 1, T), dtype=jnp.float32)

    # Parameter init exactly as in __init__: Scale(channels) -> ones(1, C, 1).
    scale = jnp.ones((1, C, 1), dtype=jnp.float32)

    out = spec_block(x, wav, scale, channels=C, stride=S)
    out = jax.block_until_ready(out)
    assert out.shape == (B, C, Tp) and out.dtype == jnp.float32

    # Pure-JAX reference of the same forward semantics.
    dct_np = _dct_ii_basis(C)                                  # (K, N)

    def reference(x_, wav_, scale_, tp_):
        fr = wav_.reshape(x_.shape[0], tp_, C)
        y = jnp.einsum("btn,kn->bkt", fr, dct_np)              # (B, C, T')
        return x_ + scale_ * jnp.log(jnp.maximum(y, 1e-5))

    def check(out_, ref_, x_, scale_):
        out_np, ref_np = np.asarray(out_), np.asarray(ref_)
        x_np, s_np = np.asarray(x_), np.asarray(scale_)
        # log() has slope up to 1/1e-5 at the clamp threshold, so a few-ulp
        # difference between the MXU matmul and the XLA reference matmul can be
        # amplified to O(1e-1) in the log domain for near-zero coefficients.
        # Direct end-to-end check against that worst-case bound:
        np.testing.assert_allclose(out_np, ref_np, rtol=1e-4, atol=2.5e-1)
        # Tight check: invert the compression (still exercises the residual add
        # and channelwise scale, since the spectrogram is reconstructed from
        # the kernel output) and compare at f32-level tolerances; atol is in
        # units of the 1e-5 clamp floor.
        spec_k = np.exp((out_np - x_np) / s_np)
        spec_r = np.exp((ref_np - x_np) / s_np)
        np.testing.assert_allclose(spec_k, spec_r, rtol=1e-4, atol=1e-5)

    check(out, reference(x, wav, scale, Tp), x, scale)

    # Ragged, multi-step time grid (T' not a multiple of the tile -> partial
    # last tile, no padding pass in the wrapper) with a non-trivial scale.
    Tp2 = 600
    x2 = jax.random.normal(kx2, (B, C, Tp2), dtype=jnp.float32)
    wav2 = jax.random.normal(kw2, (B, 1, Tp2 * S), dtype=jnp.float32)
    scale2 = 0.5 + jax.random.uniform(ks, (1, C, 1), dtype=jnp.float32)
    out2 = spec_block(x2, wav2, scale2, channels=C, stride=S, tm=256)
    out2 = jax.block_until_ready(out2)
    assert out2.shape == (B, C, Tp2)
    check(out2, reference(x2, wav2, scale2, Tp2), x2, scale2)

    # TODO(synk): the 'stft' (STFTOnnx) and '1x1' (SConv1d) SpecBlock variants
    # and the 'abs_log' / power compressions are not implemented (their source
    # was not provided); only the dct + log + channelwise_scale path is realized.
    print("KERNEL_OK")
</pallas_src>

<mosaic_0001>
module attributes {stable_mosaic.version = 11 : i64} {
  func.func @kernel(%arg0: i32, %arg1: i32, %arg2: memref<1x512x16xf32, #tpu.memory_space<vmem>>, %arg3: memref<16x16xf32, #tpu.memory_space<vmem>>, %arg4: memref<16x1xf32, #tpu.memory_space<vmem>>, %arg5: memref<1x16x512xf32, #tpu.memory_space<vmem>>, %arg6: memref<1x16x512xf32, #tpu.memory_space<vmem>>) attributes {dimension_semantics = [#tpu.dimension_semantics<parallel>, #tpu.dimension_semantics<parallel>], iteration_bounds = array<i64: 2, 1>, scalar_prefetch = 0 : i64, scratch_operands = 0 : i64, tpu.core_type = #tpu.core_type<tc>, window_params = [{transform_indices = @transform_0, window_bounds = array<i64: 1, 512, 16>}, {pipeline_mode = #tpu.pipeline_mode<synchronous>, transform_indices = @transform_1, window_bounds = array<i64: 16, 16>}, {pipeline_mode = #tpu.pipeline_mode<synchronous>, transform_indices = @transform_2, window_bounds = array<i64: 16, 1>}, {transform_indices = @transform_3, window_bounds = array<i64: 1, 16, 512>}, {transform_indices = @transform_4, window_bounds = array<i64: 1, 16, 512>}]} {
    %c0 = arith.constant 0 : index
    %c0_0 = arith.constant 0 : index
    %c0_1 = arith.constant 0 : index
    %0 = vector.load %arg2[%c0, %c0_0, %c0_1] : memref<1x512x16xf32, #tpu.memory_space<vmem>>, vector<1x512x16xf32>
    %1 = vector.shape_cast %0 : vector<1x512x16xf32> to vector<512x16xf32>
    %c0_2 = arith.constant 0 : index
    %c0_3 = arith.constant 0 : index
    %2 = vector.load %arg3[%c0_2, %c0_3] : memref<16x16xf32, #tpu.memory_space<vmem>>, vector<16x16xf32>
    %3 = tpu.transpose %2, [1, 0] : vector<16x16xf32> -> vector<16x16xf32>
    %cst = arith.constant dense<0.000000e+00> : vector<512x16xf32>
    %4 = tpu.matmul %1, %3, %cst {dimension_numbers = #tpu.dot_dimension_numbers<[1], [0], [0], [1], [0, 0, 1, 1], [], []>} : vector<512x16xf32>, vector<16x16xf32>, vector<512x16xf32> -> vector<512x16xf32>
    %5 = tpu.transpose %4, [1, 0] : vector<512x16xf32> -> vector<16x512xf32>
    %cst_4 = arith.constant 9.99999974E-6 : f32
    %6 = vector.broadcast %cst_4 : f32 to vector<16x512xf32>
    %7 = arith.maximumf %5, %6 : vector<16x512xf32>
    %8 = math.log %7 : vector<16x512xf32>
    %c0_5 = arith.constant 0 : index
    %c0_6 = arith.constant 0 : index
    %c0_7 = arith.constant 0 : index
    %9 = vector.load %arg5[%c0_5, %c0_6, %c0_7] : memref<1x16x512xf32, #tpu.memory_space<vmem>>, vector<1x16x512xf32>
    %10 = vector.shape_cast %9 : vector<1x16x512xf32> to vector<16x512xf32>
    %c0_8 = arith.constant 0 : index
    %c0_9 = arith.constant 0 : index
    %11 = vector.load %arg4[%c0_8, %c0_9] : memref<16x1xf32, #tpu.memory_space<vmem>>, vector<16x1xf32>
    %12 = vector.broadcast %11 : vector<16x1xf32> to vector<16x512xf32>
    %13 = arith.mulf %12, %8 : vector<16x512xf32>
    %14 = arith.addf %10, %13 : vector<16x512xf32>
    %c0_10 = arith.constant 0 : index
    %c0_11 = arith.constant 0 : index
    %c0_12 = arith.constant 0 : index
    %15 = vector.load %arg6[%c0_10, %c0_11, %c0_12] : memref<1x16x512xf32, #tpu.memory_space<vmem>>, vector<1x16x512xf32>
    %16 = vector.shape_cast %15 : vector<1x16x512xf32> to vector<16x512xf32>
    %17 = vector.shape_cast %14 : vector<16x512xf32> to vector<1x16x512xf32>
    tpu.vector_store %arg6[%c0_10, %c0_11, %c0_12], %17 {strides = array<i32>} : memref<1x16x512xf32, #tpu.memory_space<vmem>>, vector<1x16x512xf32>,
    return
  }
  func.func @transform_0(%arg0: i32, %arg1: i32) -> (i32, i32, i32) {
    %c0_i32 = arith.constant 0 : i32
    %c0_i32_0 = arith.constant 0 : i32
    return %arg0, %arg1, %c0_i32 : i32, i32, i32
  }
  func.func @transform_1(%arg0: i32, %arg1: i32) -> (i32, i32) {
    %c0_i32 = arith.constant 0 : i32
    %c0_i32_0 = arith.constant 0 : i32
    %c0_i32_1 = arith.constant 0 : i32
    return %c0_i32, %c0_i32_0 : i32, i32
  }
  func.func @transform_2(%arg0: i32, %arg1: i32) -> (i32, i32) {
    %c0_i32 = arith.constant 0 : i32
    %c0_i32_0 = arith.constant 0 : i32
    %c0_i32_1 = arith.constant 0 : i32
    return %c0_i32, %c0_i32_0 : i32, i32
  }
  func.func @transform_3(%arg0: i32, %arg1: i32) -> (i32, i32, i32) {
    %c0_i32 = arith.constant 0 : i32
    %c0_i32_0 = arith.constant 0 : i32
    return %arg0, %c0_i32, %arg1 : i32, i32, i32
  }
  func.func @transform_4(%arg0: i32, %arg1: i32) -> (i32, i32, i32) {
    %c0_i32 = arith.constant 0 : i32
    %c0_i32_0 = arith.constant 0 : i32
    return %arg0, %c0_i32, %arg1 : i32, i32, i32
  }
}

</mosaic_0001>

<bundles_post_ra>
// kernel: tpu_custom_call.1
= control target key start
LH: loop header
LB: loop body
LE: loop exit
PB: predicated region body
PF: predicated region fallthrough
CT: control target
= control target key end

     0   :  { %9 = vsyncpa [#allocation3], 0  ;;  %s2024_s0 = inlined_call_operand.vmem [shape: f32[2,512,16], index: 0, kind: input, shape index: {}]   ;;  %s2025_s1 = inlined_call_operand.vmem [shape: f32[16,16], index: 1, kind: input, shape index: {}]   ;;  %s2026_s2 = inlined_call_operand.vmem [shape: f32[16,1], index: 2, kind: input, shape index: {}]   ;;  %s2027_s3 = inlined_call_operand.vmem [shape: f32[2,16,512], index: 3, kind: input, shape index: {}]   ;;  %s2028_s4 = inlined_call_operand.hbm [shape: f32[2,16,512], index: 4, kind: output, shape index: {}]  }
   0x1   :  { %11 = vsyncpa [#allocation3 + $0x1], 0  ;;  %s1665_s15 = smov 0   ;;  %s1667_s16 = smov 0  }
   0x2   :  { %s1669_s17 = smov 0   ;;  %s1671_s18 = smov 0  }
   0x3   :  { %s1673_s19 = smov 0   ;;  %s1675_s20 = smov 0  }
   0x4 LB: > { %s1222_s21 = sadd.s32 4294967295, %s1634_s20   ;;  %s1223_s22 = sadd.s32 4294967294, %s1634_s20   ;;  %s1634_s20 = sphi %s1675_s20, %s17_s20   ;;  %s1630_s19 = sphi %s1673_s19, %s2035_s19   ;;  %s1626_s18 = sphi %s1671_s18, %s2034_s18   ;;  %s1622_s17 = sphi %s1669_s17, %s2033_s17   ;;  %s1618_s16 = sphi %s1667_s16, %s2032_s16   ;;  %s1614_s15 = sphi %s1665_s15, %s2031_s15  }
   0x5   : > { %s29_s23 = sadd.s32 1, %s1630_s19  ;;  %s136_s24 = sadd.s32 1, %s1622_s17 }
   0x6   : > { %p31_p0 = scmp.ge.s32.totalorder %s29_s23, 2  ;;  %p146_p1 = scmp.ne.s32.totalorder %s1622_s17, %s1618_s16 }
   0x7   : > { %p147_p2 = scmp.eq.s32.totalorder %s1222_s21, 1  ;;  %p152_p3 = scmp.ne.s32.totalorder %s1618_s16, %s1614_s15 }
   0x8   : > { %s2037_s23 = smov (%p31_p0, %s29_s23), 0  ;;  %p153_p5 = scmp.eq.s32.totalorder %s1223_s22, 1 }
   0x9   : > { %p1705_p4 = por %p147_p2, %p146_p1  ;;  %s131_s26 = ssub.s32 %s1630_s19, %s2037_s23 }
   0xa   : > { %p1226_p6 = scmp.ge.s32.totalorder %s1634_s20, 1  ;;  %p134_p7 = scmp.eq.s32.totalorder %s131_s26, 0 }
   0xb   : > { %p1712_p8 = por %p153_p5, %p152_p3  ;;  %p203_p9 = scmp.lt.s32.totalorder %s1634_s20, 3 }
   0xc   : > { %s1718_s28 = scalar_select %p134_p7, %s1622_s17, %s136_s24  }
   0xd   : > { %p204_p10 = pnand %p1226_p6, %p203_p9 }
   0xe   : > { %v327_v0 = vld [vmem:[%s2025_s1] sm:$0xff] (!%p204_p10)  ;;  %v328_v1 = vld [vmem:[%s2025_s1 + $0x8] sm:$0xff] (!%p204_p10)  ;;  %vm329_vm0 = vcmask (!%p204_p10), 130048   ;;  %p243_p11 = scmp.lt.s32.totalorder (!%p204_p10), %s1626_s18, 1  ;;  %v1636_v4 = vmov (!%p204_p10), 0   ;;  %s239_s24 = sand.u32 (!%p204_p10), 1, %s1618_s16  }
   0xf   : > { %207 = sbr.rel (%p204_p10) target bundleno = 504 (0x1f8), region = 36  ;;  %v1073_v2 = vld [vmem:[%s2026_s2] sm:$0xff] (!%p204_p10)  ;;  %v1472_v3 = vpack.c.bf16 (!%p204_p10), %v328_v1, %v327_v0  ;;  %vm1473_vm1 = vmpackc.low (!%p204_p10), %vm329_vm0, %vm329_vm0  ;;  %1538 = vset.pattern.permute.xlu1 (!%p204_p10), %v1636_v4  ;;  %v1074_v5 = vld [vmem:[%s2026_s2 + $0x8] sm:$0xff] (!%p204_p10)  ;;  %s1227_s5 = sshll.u32 (!%p204_p10), %s239_s24, 6 }
  0x10   : > { %1077 = vperm.xlu1 (!%p204_p10), %1538, %v1073_v2   ;;  %s1941_s6 = scalar_lea.vmem (!%p204_p10), [#allocation2], %s1227_s5  ;;  %s1305_s7 = sshll.u32 (!%p204_p10), %s1626_s18, 10 }
  0x11   : > { %1474 = vmatprep.subr.msk.bf16.mxu0 (!%p204_p10), %vm1473_vm1, %v1472_v3  ;;  %1478 = vmatprep.subr.msk.bf16.mxu1 (!%p204_p10), %vm1473_vm1, %v1472_v3  ;;  %s1125_s8 = sshll.u32 (!%p204_p10), %s1941_s6, 4  ;;  %s1971_s11 = scalar_lea.hbm (!%p204_p10), %s2028_s4, %s1305_s7  ;;  %s1973_s8 = int_to_ptr.vmem [resolvable:$true] %s1125_s8 }
  0x12   : > { %1477 = vmatpush3.bf16.xpose.msk.msra.mxu0 (!%p204_p10), %vm1473_vm1, %v1472_v3  ;;  %1479 = vmatpush3.bf16.xpose.msk.msra.mxu1 (!%p204_p10), %vm1473_vm1, %v1472_v3  ;;  %s1637_s13 = smov (!%p204_p10), [#allocation2]  }
  0x13   : > { %s1560_s14 = sshll.u32 (!%p204_p10), %s1637_s13, 4  ;;  %s1561_s14 = int_to_ptr.vmem [resolvable:$false] %s1560_s14 }
  0x14   : > { %1082 = vperm.xlu1 (!%p204_p10), %1538, %v1074_v5   ;;  %p1563_p1 = scmp.lt.s32.totalorder (!%p204_p10), %s1973_s8, %s1561_s14 }
  0x16   : > { %s1734_s9 = scalar_select %p243_p11, %s1626_s18, 1 }
  0x17   : > { %s1556_s18 = scalar_lea.vmem %s1973_s8, 1024 }
  0x18   : > { %s1303_s12 = sshll.u32 %s1734_s9, 9  ;;  %s1304_s22 = sshll.u32 %s1734_s9, 6 }
  0x19   : > { %s1743_s21 = scalar_lea.vmem %s2024_s0, %s1303_s12  ;;  %s1930_s30 = scalar_lea.vmem %s2027_s3, %s1304_s22 }
  0x1a   : > { %v263_v6 = vld [vmem:[%s1743_s21] sm:$0xff]  ;;  %v264_v7 = vld [vmem:[%s1743_s21 + $0x8] sm:$0xff]  ;;  %v265_v8 = vld [vmem:[%s1743_s21 + $0x10] sm:$0xff]  ;;  %s1978_s12 = scalar_lea.sflag [#allocation3], %s239_s24  ;;  %p1557_p12 = scmp.ne.s32.totalorder %s1973_s8, %s1556_s18 }
  0x1b   : > { %1376 = vmatprep.mubr.msk.f32.mxu0 %vm329_vm0, %v263_v6  ;;  %v266_v9 = vld [vmem:[%s1743_s21 + $0x18] sm:$0xff]  ;;  %v267_v10 = vld [vmem:[%s1743_s21 + $0x20] sm:$0xff]  ;;  %v296_v12 = vld [vmem:[%s1743_s21 + $0x108] sm:$0xff] }
  0x1c   : > { %1377 = vmatmul.mubr.msk.f32.vlgmr.msra.gmra.mrb[0].mxu0 %vm329_vm0, %v264_v7  ;;  %v295_v11 = vld [vmem:[%s1743_s21 + $0x100] sm:$0xff]  ;;  %v297_v13 = vld [vmem:[%s1743_s21 + $0x110] sm:$0xff]  ;;  %v268_v14 = vld [vmem:[%s1743_s21 + $0x28] sm:$0xff]  ;;  %p1558_p13 = pnand %p1557_p12, %p1705_p4 }
  0x1d   : > { %1379 = vmatprep.mubr.msk.f32.mxu0 %vm329_vm0, %v265_v8  ;;  %1424 = vmatprep.mubr.msk.f32.mxu1 %vm329_vm0, %v295_v11  ;;  %v269_v15 = vld [vmem:[%s1743_s21 + $0x30] sm:$0xff]  ;;  %v298_v16 = vld [vmem:[%s1743_s21 + $0x118] sm:$0xff]  ;;  %v299_v17 = vld [vmem:[%s1743_s21 + $0x120] sm:$0xff] }
  0x1e   : > { %1425 = vmatmul.mubr.msk.f32.vlgmr.msra.gmra.mrb[0].mxu1 %vm329_vm0, %v296_v12  ;;  %v270_v18 = vld [vmem:[%s1743_s21 + $0x38] sm:$0xff]  ;;  %v271_v19 = vld [vmem:[%s1743_s21 + $0x40] sm:$0xff]  ;;  %v300_v20 = vld [vmem:[%s1743_s21 + $0x128] sm:$0xff]  ;;  %p1559_p0 = pneg %p1558_p13 }
  0x1f   : > { %1427 = vmatprep.mubr.msk.f32.mxu1 %vm329_vm0, %v297_v13  ;;  %v301_v21 = vld [vmem:[%s1743_s21 + $0x130] sm:$0xff]  ;;  %v272_v22 = vld [vmem:[%s1743_s21 + $0x48] sm:$0xff]  ;;  %v302_v24 = vld [vmem:[%s1743_s21 + $0x138] sm:$0xff] }
  0x20   : > { %1380 = vmatmul.mubr.msk.f32.gmra.mrb[2].mxu0 %vm329_vm0, %v266_v9  ;;  %v273_v23 = vld [vmem:[%s1743_s21 + $0x50] sm:$0xff]  ;;  %v303_v25 = vld [vmem:[%s1743_s21 + $0x140] sm:$0xff]  ;;  %v274_v26 = vld [vmem:[%s1743_s21 + $0x58] sm:$0xff] }
  0x21   : > { %1382 = vmatprep.mubr.msk.f32.mxu0 %vm329_vm0, %v267_v10  ;;  %v275_v27 = vld [vmem:[%s1743_s21 + $0x60] sm:$0xff]  ;;  %v304_v28 = vld [vmem:[%s1743_s21 + $0x148] sm:$0xff]  ;;  %v305_v29 = vld [vmem:[%s1743_s21 + $0x150] sm:$0xff] }
  0x22   : > { %1428 = vmatmul.mubr.msk.f32.gmra.mrb[2].mxu1 %vm329_vm0, %v298_v16  ;;  %v276_v30 = vld [vmem:[%s1743_s21 + $0x68] sm:$0xff]  ;;  %v277_v31 = vld [vmem:[%s1743_s21 + $0x70] sm:$0xff]  ;;  %v306_v32 = vld [vmem:[%s1743_s21 + $0x158] sm:$0xff] }
  0x23   : > { %1430 = vmatprep.mubr.msk.f32.mxu1 %vm329_vm0, %v299_v17  ;;  %v307_v33 = vld [vmem:[%s1743_s21 + $0x160] sm:$0xff]  ;;  %v278_v34 = vld [vmem:[%s1743_s21 + $0x78] sm:$0xff]  ;;  %v308_v36 = vld [vmem:[%s1743_s21 + $0x168] sm:$0xff] }
  0x24   : > { %1383 = vmatmul.mubr.msk.f32.gmra.mrb[4].mxu0 %vm329_vm0, %v268_v14  ;;  %v279_v35 = vld [vmem:[%s1743_s21 + $0x80] sm:$0xff]  ;;  %v309_v37 = vld [vmem:[%s1743_s21 + $0x170] sm:$0xff]  ;;  %v280_v38 = vld [vmem:[%s1743_s21 + $0x88] sm:$0xff] }
  0x25   : > { %1385 = vmatprep.mubr.msk.f32.mxu0 %vm329_vm0, %v269_v15  ;;  %v281_v39 = vld [vmem:[%s1743_s21 + $0x90] sm:$0xff]  ;;  %v310_v40 = vld [vmem:[%s1743_s21 + $0x178] sm:$0xff]  ;;  %v311_v41 = vld [vmem:[%s1743_s21 + $0x180] sm:$0xff] }
  0x26   : > { %1431 = vmatmul.mubr.msk.f32.gmra.mrb[4].mxu1 %vm329_vm0, %v300_v20  ;;  %v282_v42 = vld [vmem:[%s1743_s21 + $0x98] sm:$0xff]  ;;  %v283_v43 = vld [vmem:[%s1743_s21 + $0xa0] sm:$0xff]  ;;  %v312_v44 = vld [vmem:[%s1743_s21 + $0x188] sm:$0xff] }
  0x27   : > { %1433 = vmatprep.mubr.msk.f32.mxu1 %vm329_vm0, %v301_v21  ;;  %v313_v45 = vld [vmem:[%s1743_s21 + $0x190] sm:$0xff]  ;;  %v284_v46 = vld [vmem:[%s1743_s21 + $0xa8] sm:$0xff]  ;;  %v314_v48 = vld [vmem:[%s1743_s21 + $0x198] sm:$0xff] }
  0x28   : > { %1386 = vmatmul.mubr.msk.f32.gmra.mrb[6].mxu0 %vm329_vm0, %v270_v18  ;;  %v285_v47 = vld [vmem:[%s1743_s21 + $0xb0] sm:$0xff]  ;;  %v315_v49 = vld [vmem:[%s1743_s21 + $0x1a0] sm:$0xff]  ;;  %v286_v50 = vld [vmem:[%s1743_s21 + $0xb8] sm:$0xff] }
  0x29   : > { %1388 = vmatprep.mubr.msk.f32.mxu0 %vm329_vm0, %v271_v19  ;;  %v287_v51 = vld [vmem:[%s1743_s21 + $0xc0] sm:$0xff]  ;;  %v316_v52 = vld [vmem:[%s1743_s21 + $0x1a8] sm:$0xff]  ;;  %v317_v53 = vld [vmem:[%s1743_s21 + $0x1b0] sm:$0xff] }
  0x2a   : > { %1434 = vmatmul.mubr.msk.f32.gmra.mrb[6].mxu1 %vm329_vm0, %v302_v24  ;;  %v288_v54 = vld [vmem:[%s1743_s21 + $0xc8] sm:$0xff]  ;;  %v289_v55 = vld [vmem:[%s1743_s21 + $0xd0] sm:$0xff]  ;;  %v318_v56 = vld [vmem:[%s1743_s21 + $0x1b8] sm:$0xff] }
  0x2b   : > { %1436 = vmatprep.mubr.msk.f32.mxu1 %vm329_vm0, %v303_v25  ;;  %v319_v57 = vld [vmem:[%s1743_s21 + $0x1c0] sm:$0xff]  ;;  %v290_v58 = vld [vmem:[%s1743_s21 + $0xd8] sm:$0xff]  ;;  %v320_v60 = vld [vmem:[%s1743_s21 + $0x1c8] sm:$0xff] }
  0x2c   : > { %1389 = vmatmul.mubr.msk.f32.gmra.mrb[8].mxu0 %vm329_vm0, %v272_v22  ;;  %v291_v59 = vld [vmem:[%s1743_s21 + $0xe0] sm:$0xff]  ;;  %v321_v61 = vld [vmem:[%s1743_s21 + $0x1d0] sm:$0xff]  ;;  %v292_v62 = vld [vmem:[%s1743_s21 + $0xe8] sm:$0xff] }
  0x2d   : > { %1391 = vmatprep.mubr.msk.f32.mxu0 %vm329_vm0, %v273_v23  ;;  %v293_v63 = vld [vmem:[%s1743_s21 + $0xf0] sm:$0xff]  ;;  %v322_v0 = vld [vmem:[%s1743_s21 + $0x1d8] sm:$0xff]  ;;  %v323_v1 = vld [vmem:[%s1743_s21 + $0x1e0] sm:$0xff] }
  0x2e   : > { %1437 = vmatmul.mubr.msk.f32.gmra.mrb[8].mxu1 %vm329_vm0, %v304_v28  ;;  %v294_v2 = vld [vmem:[%s1743_s21 + $0xf8] sm:$0xff]  ;;  %v324_v3 = vld [vmem:[%s1743_s21 + $0x1e8] sm:$0xff]  ;;  %v325_v5 = vld [vmem:[%s1743_s21 + $0x1f0] sm:$0xff] }
  0x2f   : > { %1439 = vmatprep.mubr.msk.f32.mxu1 %vm329_vm0, %v305_v29  ;;  %v326_v6 = vld [vmem:[%s1743_s21 + $0x1f8] sm:$0xff]  ;;  %s1562_s21 = scalar_lea.vmem %s1561_s14, 2048 }
  0x30   : > { %1392 = vmatmul.mubr.msk.f32.gmra.mrb[10].mxu0 %vm329_vm0, %v274_v26  ;;  %p1564_p2 = scmp.lt.s32.totalorder %s1562_s21, %s1556_s18 }
  0x31   : > { %1394 = vmatprep.mubr.msk.f32.mxu0 %vm329_vm0, %v275_v27 }
  0x32   : > { %1440 = vmatmul.mubr.msk.f32.gmra.mrb[10].mxu1 %vm329_vm0, %v306_v32  ;;  %p1565_p3 = por %p1564_p2, %p1563_p1 }
  0x33   : > { %1442 = vmatprep.mubr.msk.f32.mxu1 %vm329_vm0, %v307_v33 }
  0x34   : > { %1395 = vmatmul.mubr.msk.f32.gmra.mrb[12].mxu0 %vm329_vm0, %v276_v30  ;;  %p1566_p5 = pnand %p1565_p3, %p1559_p0 }
  0x35   : > { %1397 = vmatprep.mubr.msk.f32.mxu0 %vm329_vm0, %v277_v31 }
  0x36   : > { %1443 = vmatmul.mubr.msk.f32.gmra.mrb[12].mxu1 %vm329_vm0, %v308_v36 }
  0x37   : > { %1445 = vmatprep.mubr.msk.f32.mxu1 %vm329_vm0, %v309_v37 }
  0x38   : > { %1398 = vmatmul.mubr.msk.f32.gmra.mrb[14].mxu0 %vm329_vm0, %v278_v34 }
  0x39   : > { %1400 = vmatprep.mubr.msk.f32.mxu0 %vm329_vm0, %v279_v35 }
  0x3a   : > { %1446 = vmatmul.mubr.msk.f32.gmra.mrb[14].mxu1 %vm329_vm0, %v310_v40 }
  0x3b   : > { %1448 = vmatprep.mubr.msk.f32.mxu1 %vm329_vm0, %v311_v41 }
  0x3c   : > { %1401 = vmatmul.mubr.msk.f32.gmra.mrb[16].mxu0 %vm329_vm0, %v280_v38 }
  0x3d   : > { %1403 = vmatprep.mubr.msk.f32.mxu0 %vm329_vm0, %v281_v39 }
  0x3e   : > { %1449 = vmatmul.mubr.msk.f32.gmra.mrb[16].mxu1 %vm329_vm0, %v312_v44 }
  0x3f   : > { %1451 = vmatprep.mubr.msk.f32.mxu1 %vm329_vm0, %v313_v45 }
  0x40   : > { %1404 = vmatmul.mubr.msk.f32.gmra.mrb[18].mxu0 %vm329_vm0, %v282_v42 }
  0x41   : > { %1406 = vmatprep.mubr.msk.f32.mxu0 %vm329_vm0, %v283_v43 }
  0x42   : > { %1452 = vmatmul.mubr.msk.f32.gmra.mrb[18].mxu1 %vm329_vm0, %v314_v48 }
  0x43   : > { %1454 = vmatprep.mubr.msk.f32.mxu1 %vm329_vm0, %v315_v49 }
  0x44   : > { %1407 = vmatmul.mubr.msk.f32.gmra.mrb[20].mxu0 %vm329_vm0, %v284_v46 }
  0x45   : > { %1409 = vmatprep.mubr.msk.f32.mxu0 %vm329_vm0, %v285_v47 }
  0x46   : > { %1455 = vmatmul.mubr.msk.f32.gmra.mrb[20].mxu1 %vm329_vm0, %v316_v52 }
  0x47   : > { %1457 = vmatprep.mubr.msk.f32.mxu1 %vm329_vm0, %v317_v53 }
  0x48   : > { %1410 = vmatmul.mubr.msk.f32.gmra.mrb[22].mxu0 %vm329_vm0, %v286_v50 }
  0x49   : > { %1412 = vmatprep.mubr.msk.f32.mxu0 %vm329_vm0, %v287_v51 }
  0x4a   : > { %1458 = vmatmul.mubr.msk.f32.gmra.mrb[22].mxu1 %vm329_vm0, %v318_v56 }
  0x4b   : > { %1460 = vmatprep.mubr.msk.f32.mxu1 %vm329_vm0, %v319_v57 }
  0x4c   : > { %1413 = vmatmul.mubr.msk.f32.gmra.mrb[24].mxu0 %vm329_vm0, %v288_v54 }
  0x4d   : > { %1415 = vmatprep.mubr.msk.f32.mxu0 %vm329_vm0, %v289_v55 }
  0x4e   : > { %1461 = vmatmul.mubr.msk.f32.gmra.mrb[24].mxu1 %vm329_vm0, %v320_v60 }
  0x4f   : > { %1463 = vmatprep.mubr.msk.f32.mxu1 %vm329_vm0, %v321_v61 }
  0x50   : > { %1416 = vmatmul.mubr.msk.f32.gmra.mrb[26].mxu0 %vm329_vm0, %v290_v58 }
  0x51   : > { %1418 = vmatprep.mubr.msk.f32.mxu0 %vm329_vm0, %v291_v59 }
  0x52   : > { %1464 = vmatmul.mubr.msk.f32.gmra.mrb[26].mxu1 %vm329_vm0, %v322_v0 }
  0x53   : > { %1466 = vmatprep.mubr.msk.f32.mxu1 %vm329_vm0, %v323_v1 }
  0x54   : > { %1419 = vmatmul.mubr.msk.f32.gmra.mrb[28].mxu0 %vm329_vm0, %v292_v62 }
  0x55   : > { %1421 = vmatprep.mubr.msk.f32.mxu0 %vm329_vm0, %v293_v63 }
  0x56   : > { %1467 = vmatmul.mubr.msk.f32.gmra.mrb[28].mxu1 %vm329_vm0, %v324_v3 }
  0x57   : > { %1469 = vmatprep.mubr.msk.f32.mxu1 %vm329_vm0, %v325_v5 }
  0x58   : > { %1422 = vmatmul.mubr.msk.f32.gmra.mrb[30].mxu0 %vm329_vm0, %v294_v2 }
  0x5a   : > { %1470 = vmatmul.mubr.msk.f32.gmra.mrb[30].mxu1 %vm329_vm0, %v326_v6 }
  0xef   : > { %v1378_v7 = vpop.f32.mrb[0].mxu0 }
  0xf0   : > { %v594_v8 = vpop.f32.mrb[1].mxu0 }
  0xf1   : > { %913 = vxpose.xlu0.b32.start [1/16] (narrow) %v594_v8, 16  ;;  %v1873_v11 = vpop.f32.mrb[0].mxu1 }
  0xf2   : > { %v1875_v12 = vpop.f32.mrb[1].mxu1 }
  0xf3   : > { %v1381_v9 = vpop.f32.mrb[2].mxu0 }
  0xf4   : > { %v604_v10 = vpop.f32.mrb[3].mxu0 }
  0xf5   : > { %914 = vxpose.xlu0.b32.cont [2/16] (narrow) %v1378_v7, 16  ;;  %v1877_v15 = vpop.f32.mrb[2].mxu1 }
  0xf6   : > { %v1879_v16 = vpop.f32.mrb[3].mxu1 }
  0xf7   : > { %v1384_v13 = vpop.f32.mrb[4].mxu0 }
  0xf8   : > { %v614_v14 = vpop.f32.mrb[5].mxu0 }
  0xf9   : > { %915 = vxpose.xlu0.b32.cont [3/16] (narrow) %v604_v10, 16  ;;  %v1881_v19 = vpop.f32.mrb[4].mxu1 }
  0xfa   : > { %v1883_v20 = vpop.f32.mrb[5].mxu1 }
  0xfb   : > { %v1387_v17 = vpop.f32.mrb[6].mxu0 }
  0xfc   : > { %v624_v18 = vpop.f32.mrb[7].mxu0 }
  0xfd   : > { %916 = vxpose.xlu0.b32.cont [4/16] (narrow) %v1381_v9, 16  ;;  %v1885_v23 = vpop.f32.mrb[6].mxu1 }
  0xfe   : > { %v1887_v24 = vpop.f32.mrb[7].mxu1 }
  0xff   : > { %v1390_v21 = vpop.f32.mrb[8].mxu0 }
 0x100   : > { %v634_v22 = vpop.f32.mrb[9].mxu0 }
 0x101   : > { %917 = vxpose.xlu0.b32.cont [5/16] (narrow) %v614_v14, 16  ;;  %v1889_v27 = vpop.f32.mrb[8].mxu1 }
 0x102   : > { %v1891_v28 = vpop.f32.mrb[9].mxu1 }
 0x103   : > { %v1393_v25 = vpop.f32.mrb[10].mxu0 }
 0x104   : > { %v644_v26 = vpop.f32.mrb[11].mxu0 }
 0x105   : > { %918 = vxpose.xlu0.b32.cont [6/16] (narrow) %v1384_v13, 16  ;;  %v1893_v31 = vpop.f32.mrb[10].mxu1  ;;  %v1932_v13 = vpop.permute.xlu1 %1077 }
 0x106   : > { %v1895_v32 = vpop.f32.mrb[11].mxu1 }
 0x107   : > { %v1396_v29 = vpop.f32.mrb[12].mxu0 }
 0x108   : > { %v654_v30 = vpop.f32.mrb[13].mxu0 }
 0x109   : > { %919 = vxpose.xlu0.b32.cont [7/16] (narrow) %v624_v18, 16  ;;  %v1897_v35 = vpop.f32.mrb[12].mxu1 }
 0x10a   : > { %v1899_v36 = vpop.f32.mrb[13].mxu1 }
 0x10b   : > { %v1399_v33 = vpop.f32.mrb[14].mxu0 }
 0x10c   : > { %v664_v34 = vpop.f32.mrb[15].mxu0 }
 0x10d   : > { %920 = vxpose.xlu0.b32.cont [8/16] (narrow) %v1387_v17, 16  ;;  %v1901_v39 = vpop.f32.mrb[14].mxu1 }
 0x10e   : > { %v1903_v40 = vpop.f32.mrb[15].mxu1 }
 0x10f   : > { %v1402_v37 = vpop.f32.mrb[16].mxu0 }
 0x110   : > { %v674_v38 = vpop.f32.mrb[17].mxu0 }
 0x111   : > { %921 = vxpose.xlu0.b32.cont [9/16] (narrow) %v634_v22, 16  ;;  %945 = vxpose.xlu1.b32.start [1/16] (narrow) %v674_v38, 16  ;;  %v1450_v43 = vpop.f32.mrb[16].mxu1 }
 0x112   : > { %v834_v44 = vpop.f32.mrb[17].mxu1 }
 0x113   : > { %v1405_v41 = vpop.f32.mrb[18].mxu0 }
 0x114   : > { %v684_v42 = vpop.f32.mrb[19].mxu0 }
 0x115   : > { %922 = vxpose.xlu0.b32.cont [10/16] (narrow) %v1390_v21, 16  ;;  %946 = vxpose.xlu1.b32.cont [2/16] (narrow) %v1402_v37, 16  ;;  %v1453_v47 = vpop.f32.mrb[18].mxu1  ;;  %v1069_v21 = vld [vmem:[%s1930_s30 + $0x20] sm:$0xff] }
 0x116   : > { %v844_v48 = vpop.f32.mrb[19].mxu1 }
 0x117   : > { %v1408_v45 = vpop.f32.mrb[20].mxu0 }
 0x118   : > { %v694_v46 = vpop.f32.mrb[21].mxu0 }
 0x119   : > { %923 = vxpose.xlu0.b32.cont [11/16] (narrow) %v644_v26, 16  ;;  %947 = vxpose.xlu1.b32.cont [3/16] (narrow) %v684_v42, 16  ;;  %v1456_v51 = vpop.f32.mrb[20].mxu1 }
 0x11a   : > { %v854_v52 = vpop.f32.mrb[21].mxu1 }
 0x11b   : > { %v1411_v49 = vpop.f32.mrb[22].mxu0 }
 0x11c   : > { %v704_v50 = vpop.f32.mrb[23].mxu0 }
 0x11d   : > { %924 = vxpose.xlu0.b32.cont [12/16] (narrow) %v1393_v25, 16  ;;  %948 = vxpose.xlu1.b32.cont [4/16] (narrow) %v1405_v41, 16  ;;  %v1459_v55 = vpop.f32.mrb[22].mxu1 }
 0x11e   : > { %v864_v56 = vpop.f32.mrb[23].mxu1 }
 0x11f   : > { %v1414_v53 = vpop.f32.mrb[24].mxu0 }
 0x120   : > { %v714_v54 = vpop.f32.mrb[25].mxu0 }
 0x121   : > { %925 = vxpose.xlu0.b32.cont [13/16] (narrow) %v654_v30, 16  ;;  %949 = vxpose.xlu1.b32.cont [5/16] (narrow) %v694_v46, 16  ;;  %v1462_v59 = vpop.f32.mrb[24].mxu1  ;;  %v1066_v30 = vld [vmem:[%s1930_s30 + $0x8] sm:$0xff] }
 0x122   : > { %v874_v60 = vpop.f32.mrb[25].mxu1 }
 0x123   : > { %v1417_v57 = vpop.f32.mrb[26].mxu0 }
 0x124   : > { %v724_v58 = vpop.f32.mrb[27].mxu0 }
 0x125   : > { %926 = vxpose.xlu0.b32.cont [14/16] (narrow) %v1396_v29, 16  ;;  %950 = vxpose.xlu1.b32.cont [6/16] (narrow) %v1408_v45, 16  ;;  %v1465_v63 = vpop.f32.mrb[26].mxu1 }
 0x126   : > { %v884_v0 = vpop.f32.mrb[27].mxu1 }
 0x127   : > { %v1420_v61 = vpop.f32.mrb[28].mxu0 }
 0x128   : > { %v734_v62 = vpop.f32.mrb[29].mxu0 }
 0x129   : > { %927 = vxpose.xlu0.b32.cont [15/16] (narrow) %v664_v34, 16  ;;  %951 = vxpose.xlu1.b32.cont [7/16] (narrow) %v704_v50, 16  ;;  %v1905_v3 = vpop.f32.mrb[28].mxu1 }
 0x12a   : > { %v894_v5 = vpop.f32.mrb[29].mxu1 }
 0x12b   : > { %v1423_v1 = vpop.f32.mrb[30].mxu0 }
 0x12c   : > { %v744_v2 = vpop.f32.mrb[31].mxu0 }
 0x12d   : > { %928 = vxpose.xlu0.b32.end [16/16] (narrow) %v1399_v33, 16  ;;  %952 = vxpose.xlu1.b32.cont [8/16] (narrow) %v1411_v49, 16  ;;  %v1907_v6 = vpop.f32.mrb[30].mxu1 }
 0x12e   : > { %v904_v7 = vpop.f32.mrb[31].mxu1 }
 0x131   : > { %977 = vxpose.xlu0.b32.start [1/16] (narrow) %v1875_v12, 16  ;;  %953 = vxpose.xlu1.b32.cont [9/16] (narrow) %v714_v54, 16 }
 0x135   : > { %978 = vxpose.xlu0.b32.cont [2/16] (narrow) %v1873_v11, 16  ;;  %954 = vxpose.xlu1.b32.cont [10/16] (narrow) %v1414_v53, 16 }
 0x139   : > { %979 = vxpose.xlu0.b32.cont [3/16] (narrow) %v1879_v16, 16  ;;  %955 = vxpose.xlu1.b32.cont [11/16] (narrow) %v724_v58, 16 }
 0x13d   : > { %980 = vxpose.xlu0.b32.cont [4/16] (narrow) %v1877_v15, 16  ;;  %956 = vxpose.xlu1.b32.cont [12/16] (narrow) %v1417_v57, 16  ;;  %v1065_v15 = vld [vmem:[%s1930_s30] sm:$0xff]  ;;  %v1068_v57 = vld [vmem:[%s1930_s30 + $0x18] sm:$0xff] }
 0x141   : > { %981 = vxpose.xlu0.b32.cont [5/16] (narrow) %v1883_v20, 16  ;;  %957 = vxpose.xlu1.b32.cont [13/16] (narrow) %v734_v62, 16  ;;  %v1938_v20 = vpop.permute.xlu1 %1082  ;;  %v1072_v62 = vld [vmem:[%s1930_s30 + $0x38] sm:$0xff] }
 0x145   : > { %982 = vxpose.xlu0.b32.cont [6/16] (narrow) %v1881_v19, 16  ;;  %958 = vxpose.xlu1.b32.cont [14/16] (narrow) %v1420_v61, 16 }
 0x149   : > { %983 = vxpose.xlu0.b32.cont [7/16] (narrow) %v1887_v24, 16  ;;  %959 = vxpose.xlu1.b32.cont [15/16] (narrow) %v744_v2, 16 }
 0x14d   : > { %984 = vxpose.xlu0.b32.cont [8/16] (narrow) %v1885_v23, 16  ;;  %960 = vxpose.xlu1.b32.end [16/16] (narrow) %v1423_v1, 16 }
 0x151   : > { %985 = vxpose.xlu0.b32.cont [9/16] (narrow) %v1891_v28, 16  ;;  %1009 = vxpose.xlu1.b32.start [1/16] (narrow) %v834_v44, 16 }
 0x155   : > { %986 = vxpose.xlu0.b32.cont [10/16] (narrow) %v1889_v27, 16  ;;  %1010 = vxpose.xlu1.b32.cont [2/16] (narrow) %v1450_v43, 16  ;;  %v1067_v43 = vld [vmem:[%s1930_s30 + $0x10] sm:$0xff] }
 0x159   : > { %987 = vxpose.xlu0.b32.cont [11/16] (narrow) %v1895_v32, 16  ;;  %1011 = vxpose.xlu1.b32.cont [3/16] (narrow) %v844_v48, 16  ;;  %v1071_v48 = vld [vmem:[%s1930_s30 + $0x30] sm:$0xff] }
 0x15d   : > { %988 = vxpose.xlu0.b32.cont [12/16] (narrow) %v1893_v31, 16  ;;  %1012 = vxpose.xlu1.b32.cont [4/16] (narrow) %v1453_v47, 16 }
 0x161   : > { %989 = vxpose.xlu0.b32.cont [13/16] (narrow) %v1899_v36, 16  ;;  %1013 = vxpose.xlu1.b32.cont [5/16] (narrow) %v854_v52, 16 }
 0x165   : > { %990 = vxpose.xlu0.b32.cont [14/16] (narrow) %v1897_v35, 16  ;;  %1014 = vxpose.xlu1.b32.cont [6/16] (narrow) %v1456_v51, 16  ;;  %v1070_v35 = vld [vmem:[%s1930_s30 + $0x28] sm:$0xff] }
 0x169   : > { %991 = vxpose.xlu0.b32.cont [15/16] (narrow) %v1903_v40, 16  ;;  %1015 = vxpose.xlu1.b32.cont [7/16] (narrow) %v864_v56, 16 }
 0x16d   : > { %992 = vxpose.xlu0.b32.end [16/16] (narrow) %v1901_v39, 16  ;;  %1016 = vxpose.xlu1.b32.cont [8/16] (narrow) %v1459_v55, 16 }
 0x171   : > { %v929_v8 = vpop.trf.xlu0  ;;  %1017 = vxpose.xlu1.b32.cont [9/16] (narrow) %v874_v60, 16 }
 0x172   : > { %v1041_v9 = vmax.f32 %v929_v8, 1e-05 }
 0x174   : > { %1540 = vlog2.f32 %v1041_v9 }
 0x175   : > { %v930_v10 = vpop.trf.xlu0  ;;  %1018 = vxpose.xlu1.b32.cont [10/16] (narrow) %v1462_v59, 16 }
 0x176   : > { %v1045_v11 = vmax.f32 %v930_v10, 1e-05 }
 0x178   : > { %1542 = vlog2.f32 %v1045_v11 }
 0x179   : > { %1019 = vxpose.xlu1.b32.cont [11/16] (narrow) %v884_v0, 16 }
 0x17d   : > { %1020 = vxpose.xlu1.b32.cont [12/16] (narrow) %v1465_v63, 16 }
 0x17e   : > { %v1541_v12 = vpop.eup %1540 }
 0x17f   : > { %v1050_v14 = vmul.f32 0.6931472, %v1541_v12 }
 0x181   : > { %v1085_v16 = vmul.f32 %v1932_v13, %v1050_v14  ;;  %1021 = vxpose.xlu1.b32.cont [13/16] (narrow) %v894_v5, 16 }
 0x182   : > { %v1543_v17 = vpop.eup %1542 }
 0x183   : > { %v1093_v18 = vadd.f32 %v1085_v16, %v1065_v15  ;;  %v1058_v19 = vmul.f32 0.6931472, %v1543_v17 }
 0x185   : > { %1101 = vst [vmem:[%s1941_s6] sm:$0xff] %v1093_v18  ;;  %v1089_v22 = vmul.f32 %v1938_v20, %v1058_v19  ;;  %1022 = vxpose.xlu1.b32.cont [14/16] (narrow) %v1905_v3, 16 }
 0x187   : > { %v1097_v23 = vadd.f32 %v1089_v22, %v1069_v21 }
 0x189   : > { %1105 = vst [vmem:[%s1941_s6 + $0x20] sm:$0xff] %v1097_v23  ;;  %1023 = vxpose.xlu1.b32.cont [15/16] (narrow) %v904_v7, 16 }
 0x18d   : > { %1024 = vxpose.xlu1.b32.end [16/16] (narrow) %v1907_v6, 16 }
 0x191   : > { %v961_v24 = vpop.trf.xlu1 }
 0x192   : > { %v1042_v25 = vmax.f32 %v961_v24, 1e-05 }
 0x194   : > { %1544 = vlog2.f32 %v1042_v25 }
 0x195   : > { %v962_v26 = vpop.trf.xlu1 }
 0x196   : > { %v1046_v27 = vmax.f32 %v962_v26, 1e-05  ;;  %1539 = vset.pattern.permute.xlu0 %v1636_v4 }
 0x198   : > { %1546 = vlog2.f32 %v1046_v27 }
 0x19e   : > { %v1545_v28 = vpop.eup %1544 }
 0x19f   : > { %v1052_v29 = vmul.f32 0.6931472, %v1545_v28 }
 0x1a1   : > { %v1086_v31 = vmul.f32 %v1932_v13, %v1052_v29 }
 0x1a2   : > { %v1547_v32 = vpop.eup %1546 }
 0x1a3   : > { %v1094_v33 = vadd.f32 %v1086_v31, %v1066_v30  ;;  %v1060_v34 = vmul.f32 0.6931472, %v1547_v32 }
 0x1a5   : > { %1102 = vst [vmem:[%s1941_s6 + $0x8] sm:$0xff] %v1094_v33  ;;  %v1090_v36 = vmul.f32 %v1938_v20, %v1060_v34 }
 0x1a7   : > { %v1098_v37 = vadd.f32 %v1090_v36, %v1070_v35 }
 0x1a9   : > { %1106 = vst [vmem:[%s1941_s6 + $0x28] sm:$0xff] %v1098_v37 }
 0x1b1   : > { %v993_v38 = vpop.trf.xlu0 }
 0x1b2   : > { %v1043_v4 = vmax.f32 %v993_v38, 1e-05 }
 0x1b4   : > { %1548 = vlog2.f32 %v1043_v4 }
 0x1b5   : > { %v994_v39 = vpop.trf.xlu0 }
 0x1b6   : > { %v1047_v40 = vmax.f32 %v994_v39, 1e-05 }
 0x1b8   : > { %1550 = vlog2.f32 %v1047_v40 }
 0x1be   : > { %v1549_v41 = vpop.eup %1548 }
 0x1bf   : > { %v1054_v42 = vmul.f32 0.6931472, %v1549_v41 }
 0x1c1   : > { %v1087_v44 = vmul.f32 %v1932_v13, %v1054_v42 }
 0x1c2   : > { %v1551_v45 = vpop.eup %1550 }
 0x1c3   : > { %v1095_v46 = vadd.f32 %v1087_v44, %v1067_v43  ;;  %v1062_v47 = vmul.f32 0.6931472, %v1551_v45 }
 0x1c5   : > { %1103 = vst [vmem:[%s1941_s6 + $0x10] sm:$0xff] %v1095_v46  ;;  %v1091_v49 = vmul.f32 %v1938_v20, %v1062_v47 }
 0x1c7   : > { %v1099_v50 = vadd.f32 %v1091_v49, %v1071_v48 }
 0x1c9   : > { %1107 = vst [vmem:[%s1941_s6 + $0x30] sm:$0xff] %v1099_v50 }
 0x1d1   : > { %v1025_v51 = vpop.trf.xlu1 }
 0x1d2   : > { %v1044_v52 = vmax.f32 %v1025_v51, 1e-05 }
 0x1d4   : > { %1552 = vlog2.f32 %v1044_v52 }
 0x1d5   : > { %v1026_v53 = vpop.trf.xlu1 }
 0x1d6   : > { %v1048_v54 = vmax.f32 %v1026_v53, 1e-05 }
 0x1d8   : > { %1554 = vlog2.f32 %v1048_v54 }
 0x1de   : > { %v1553_v55 = vpop.eup %1552 }
 0x1df   : > { %v1056_v56 = vmul.f32 0.6931472, %v1553_v55 }
 0x1e1   : > { %v1088_v58 = vmul.f32 %v1932_v13, %v1056_v56 }
 0x1e2   : > { %v1555_v59 = vpop.eup %1554 }
 0x1e3   : > { %v1096_v60 = vadd.f32 %v1088_v58, %v1068_v57  ;;  %v1064_v61 = vmul.f32 0.6931472, %v1555_v59 }
 0x1e5   : > { %1104 = vst [vmem:[%s1941_s6 + $0x18] sm:$0xff] %v1096_v60  ;;  %v1092_v63 = vmul.f32 %v1938_v20, %v1064_v61 }
 0x1e7   : > { %v1100_v0 = vadd.f32 %v1092_v63, %v1072_v62 }
 0x1e9   : > { %1108 = vst [vmem:[%s1941_s6 + $0x38] sm:$0xff] %v1100_v0 }
 0x1ea   : > { %1569 = shalt.err (!%p1566_p5)
}
 0x1eb   : > { %s1570_s22 = scalar_lea.hbm %s1971_s11, 1024  ;;  %s1574_s29 = scalar_lea.hbm %s2028_s4, 2048 }
 0x1ec   : > { %p1571_p6 = scmp.ne.s32.totalorder %s1971_s11, %s1570_s22  ;;  %p1575_p10 = scmp.lt.u32.totalorder %s1971_s11, %s2028_s4 }
 0x1ed   : > { %p1576_p11 = scmp.lt.u32.totalorder %s1574_s29, %s1570_s22  ;;  %p1578_p13 = scmp.lt.u32.totalorder %s1570_s22, %s1971_s11 }
 0x1ee   : > { %p1572_p7 = pnand %p1571_p6, %p1705_p4 }
 0x1ef   : > { %p1577_p12 = por %p1576_p11, %p1575_p10 }
 0x1f0   : > { %p1573_p9 = pneg %p1572_p7 }
 0x1f1   : > { %p1579_p0 = por %p1578_p13, %p1577_p12 }
 0x1f3   : > { %p1580_p1 = pnand %p1579_p0, %p1573_p9 }
 0x1f5   : > { %1583 = shalt.err (!%p1580_p1)
}
 0x1f6   : > { %s1638_s6 = smov 512   ;;  %s1639_s7 = smov 32  }
 0x1f7   : > { %1480 = dma.vmem_to_hbm [thread:$0]  (%p1705_p4), %s1973_s8, 1024, %s1971_s11, %s1978_s12, %s1638_s6, %s1638_s6, %s1639_s7  }
 0x1f8 PF: > { %p1486_p2 = scmp.ge.s32.totalorder %s1634_s20, 2  ;;  %s1140_s9 = sand.u32 1, %s1614_s15  }
 0x1f9   : > { %s1141_s10 = scalar_lea.sflag [#allocation3], %s1140_s9 }
 0x1fa   : > { %p1483_p3 = pnand %p1486_p2, %p1712_p8 }
 0x1fc   : > { %1609 = dma.done.wait (!%p1483_p3), %s1141_s10, 1024  }
 0x1fd   : > { %1611 = vsyncadd (!%p1483_p3), %s1141_s10, 4294966272  ;;  %s17_s20 = sadd.s32 1, %s1634_s20   ;;  %s2031_s15 = smov %s1618_s16 }
 0x1fe   : > { %p14_p5 = scmp.ge.s32.totalorder %s17_s20, 4   ;;  %s2032_s16 = smov %s1622_s17 }
 0x1ff   : > { %s2033_s17 = smov %s1718_s28  ;;  %s2034_s18 = smov %s1630_s19 }
 0x200   : > { %s2035_s19 = smov %s2037_s23  ;;  %16 = sbr.rel (!%p14_p5) target bundleno = 4 (0x4), region = 74 }
 0x207   :  { %1146 = vsyncpa [#allocation3], 1 }
 0x208   :  { %1148 = vsyncpa [#allocation3 + $0x1], 1 }

</bundles_post_ra>
